<compile_context>
chip_gen: v7x
topology: tpu7x:2x2x1
jax: 0.10.0
libtpu: 0.0.40
codegen_flags: <defaults>
</compile_context>

<pallas_src>
import jax
import jax.numpy as jnp
from jax.experimental import pallas as pl
from jax.experimental.pallas import tpu as pltpu

HIDDEN = 768   # roberta-base hidden size (fc1 input)
FC1_OUT = 32
FC2_OUT = 1


def _round_up(x, m):
    return ((x + m - 1) // m) * m


def sarc_head_kernel(cls_ref, w1_ref, b1_ref, w2_ref, b2_ref, out_ref):
    """fc1 -> ReLU -> fc2 -> sigmoid for one batch tile.

    cls_ref : [bm, 768] f32  (VMEM tile of CLS hidden states)
    w1_ref  : [768, 32] f32  (VMEM, resident across grid steps)
    b1_ref  : [1, 32]   f32  (VMEM, resident)
    w2_ref  : [1, 32]   f32  (VMEM, resident; torch fc2.weight [out, in])
    b2_ref  : [1, 1]    f32  (SMEM scalar)
    out_ref : [bm, 1]   f32
    """
    x = cls_ref[...]
    # fc1 on the MXU, bias add + ReLU on the VPU.
    h = jnp.dot(x, w1_ref[...], preferred_element_type=jnp.float32) + b1_ref[...]
    h = jnp.maximum(h, 0.0)                                         # [bm, 32]
    # fc2: [bm,32] x [32,1] would be a degenerate MXU pass (1 output lane,
    # K=32), so use a VPU multiply + XLU lane-reduce instead.
    y = jnp.sum(h * w2_ref[...], axis=-1, keepdims=True) + b2_ref[0, 0]  # [bm,1]
    # sigmoid: exp and approx reciprocal both run on the EUP (free slots here).
    out_ref[...] = pl.reciprocal(1.0 + jnp.exp(-y), approx=True)


def sarc_head(cls_emb, w1, b1, w2, b2, *, bm_max=512):
    """Batch-tiled Pallas head.

    cls_emb : [B, 768] f32  CLS hidden states
    w1      : [768, 32], b1 : [1, 32], w2 : [1, 32], b2 : [1, 1]
    returns : [B, 1] f32
    """
    B = cls_emb.shape[0]
    # Tile the batch: bm <= 512 keeps per-tile VMEM ~1.5 MiB (x2 buffers),
    # safe on v5e's 16 MiB scoped default and v7x's 64 MiB physical VMEM.
    bm = min(bm_max, _round_up(B, 8))
    b_pad = _round_up(B, bm)
    if b_pad != B:
        cls_emb = jnp.pad(cls_emb, ((0, b_pad - B), (0, 0)))
    grid = (b_pad // bm,)

    out = pl.pallas_call(
        sarc_head_kernel,
        out_shape=jax.ShapeDtypeStruct((b_pad, FC2_OUT), jnp.float32),
        grid=grid,
        in_specs=[
            # CLS tile streams through VMEM (double-buffered by Pallas).
            pl.BlockSpec((bm, HIDDEN), lambda i: (i, 0)),
            # Weights/biases stay resident across all batch tiles.
            pl.BlockSpec((HIDDEN, FC1_OUT), lambda i: (0, 0)),
            pl.BlockSpec((1, FC1_OUT), lambda i: (0, 0)),
            pl.BlockSpec((1, FC1_OUT), lambda i: (0, 0)),
            # b2 is a scalar -> SMEM, no (8,128)-padded VMEM tile / DMA.
            pl.BlockSpec(memory_space=pltpu.MemorySpace.SMEM),
        ],
        out_specs=pl.BlockSpec((bm, FC2_OUT), lambda i: (i, 0)),
        # Batch tiles are independent: shard across both TensorCores on v7x.
        compiler_params=pltpu.CompilerParams(
            dimension_semantics=("parallel",)),
    )(cls_emb, w1, b1, w2, b2)

    return out[:B]


def sarc_classifier_forward(input_ids, attention_mask, params):
    """Mirrors SARCClassifier.forward.

    bert_out = bert(input_ids, attention_mask)[0][:, 0]   (synthetic backbone)
    x = sigmoid(fc2(relu(fc1(bert_out))))
    """
    del attention_mask  # synthetic backbone does not use it (TODO(synk) above)
    # Gather ONLY the CLS-token embeddings: [B, 768]. Never materialize the
    # full [B, S, 768] hidden states just to slice row 0.
    cls = params["emb_table"][input_ids[:, 0]]
    return sarc_head(cls, params["w1"], params["b1"], params["w2"], params["b2"])


def init_params(key, vocab_size=1000):
    k_emb, k_w1, k_b1, k_w2, k_b2 = jax.random.split(key, 5)
    # PyTorch nn.Linear default init: U(-1/sqrt(fan_in), 1/sqrt(fan_in)).
    lim1 = 1.0 / jnp.sqrt(HIDDEN)
    lim2 = 1.0 / jnp.sqrt(FC1_OUT)
    return {
        "emb_table": jax.random.normal(k_emb, (vocab_size, HIDDEN), jnp.float32) * 0.02,
        # fc1 stored as [in, out] (transposed vs torch's [out, in]).
        "w1": jax.random.uniform(k_w1, (HIDDEN, FC1_OUT), jnp.float32, -lim1, lim1),
        "b1": jax.random.uniform(k_b1, (1, FC1_OUT), jnp.float32, -lim1, lim1),
        # fc2 stored in torch layout [out, in] = [1, 32]; kernel reduces along in.
        "w2": jax.random.uniform(k_w2, (FC2_OUT, FC1_OUT), jnp.float32, -lim2, lim2),
        "b2": jax.random.uniform(k_b2, (1, FC2_OUT), jnp.float32, -lim2, lim2),
    }


if __name__ == "__main__":
    key = jax.random.PRNGKey(0)
    k_params, k_ids = jax.random.split(key)

    B, S, VOCAB = 2, 8, 1000
    params = init_params(k_params, vocab_size=VOCAB)

    input_ids = jax.random.randint(k_ids, (B, S), 0, VOCAB, dtype=jnp.int32)
    attention_mask = jnp.ones((B, S), dtype=jnp.int32)

    out = sarc_classifier_forward(input_ids, attention_mask, params)
    out = jax.block_until_ready(out)

    assert out.shape == (B, 1), out.shape
    # Approx EUP reciprocal can overshoot 1.0 by ~1e-4 near saturation.
    assert bool(jnp.all((out >= -1e-6) & (out <= 1.0 + 1e-3))), "sigmoid out of range"

    # Pure-JAX reference for the head (same math) to sanity-check the kernel.
    cls_ref = params["emb_table"][input_ids[:, 0]]
    ref = jax.nn.sigmoid(
        jnp.maximum(cls_ref @ params["w1"] + params["b1"], 0.0) @ params["w2"].T
        + params["b2"]
    )
    assert bool(jnp.allclose(out, ref, atol=2e-3, rtol=2e-3)), "kernel != reference"

    print("KERNEL_OK")
</pallas_src>

<mosaic_0001>
module attributes {stable_mosaic.version = 11 : i64} {
  func.func @sarc_head_kernel(%arg0: i32, %arg1: memref<8x768xf32, #tpu.memory_space<vmem>>, %arg2: memref<768x32xf32, #tpu.memory_space<vmem>>, %arg3: memref<1x32xf32, #tpu.memory_space<vmem>>, %arg4: memref<1x32xf32, #tpu.memory_space<vmem>>, %arg5: memref<1x1xf32, #tpu.memory_space<smem>>, %arg6: memref<8x1xf32, #tpu.memory_space<vmem>>) attributes {dimension_semantics = [#tpu.dimension_semantics<parallel>], iteration_bounds = array<i64: 1>, scalar_prefetch = 0 : i64, scratch_operands = 0 : i64, tpu.core_type = #tpu.core_type<tc>, window_params = [{transform_indices = @transform_0, window_bounds = array<i64: 8, 768>}, {pipeline_mode = #tpu.pipeline_mode<synchronous>, transform_indices = @transform_1, window_bounds = array<i64: 768, 32>}, {pipeline_mode = #tpu.pipeline_mode<synchronous>, transform_indices = @transform_2, window_bounds = array<i64: 1, 32>}, {pipeline_mode = #tpu.pipeline_mode<synchronous>, transform_indices = @transform_3, window_bounds = array<i64: 1, 32>}, {transform_indices = @transform_4, window_bounds = array<i64: 1, 1>}, {transform_indices = @transform_5, window_bounds = array<i64: 8, 1>}]} {
    %c0 = arith.constant 0 : index
    %c0_0 = arith.constant 0 : index
    %0 = vector.load %arg1[%c0, %c0_0] : memref<8x768xf32, #tpu.memory_space<vmem>>, vector<8x768xf32>
    %c0_1 = arith.constant 0 : index
    %c0_2 = arith.constant 0 : index
    %1 = vector.load %arg2[%c0_1, %c0_2] : memref<768x32xf32, #tpu.memory_space<vmem>>, vector<768x32xf32>
    %cst = arith.constant dense<0.000000e+00> : vector<8x32xf32>
    %2 = tpu.matmul %0, %1, %cst {dimension_numbers = #tpu.dot_dimension_numbers<[1], [0], [0], [1], [0, 0, 1, 1], [], []>} : vector<8x768xf32>, vector<768x32xf32>, vector<8x32xf32> -> vector<8x32xf32>
    %c0_3 = arith.constant 0 : index
    %c0_4 = arith.constant 0 : index
    %3 = vector.load %arg3[%c0_3, %c0_4] : memref<1x32xf32, #tpu.memory_space<vmem>>, vector<1x32xf32>
    %4 = vector.broadcast %3 : vector<1x32xf32> to vector<8x32xf32>
    %5 = arith.addf %2, %4 : vector<8x32xf32>
    %cst_5 = arith.constant 0.000000e+00 : f32
    %6 = vector.broadcast %cst_5 : f32 to vector<8x32xf32>
    %7 = arith.maximumf %5, %6 : vector<8x32xf32>
    %c0_6 = arith.constant 0 : index
    %c0_7 = arith.constant 0 : index
    %8 = vector.load %arg4[%c0_6, %c0_7] : memref<1x32xf32, #tpu.memory_space<vmem>>, vector<1x32xf32>
    %9 = vector.broadcast %8 : vector<1x32xf32> to vector<8x32xf32>
    %10 = arith.mulf %7, %9 : vector<8x32xf32>
    %cst_8 = arith.constant dense<0.000000e+00> : vector<8xf32>
    %11 = vector.multi_reduction <add>, %10, %cst_8 [1] : vector<8x32xf32> to vector<8xf32>
    %12 = vector.shape_cast %11 : vector<8xf32> to vector<8x1xf32>
    %c0_9 = arith.constant 0 : index
    %c0_10 = arith.constant 0 : index
    %13 = memref.load %arg5[%c0_9, %c0_10] : memref<1x1xf32, #tpu.memory_space<smem>>
    %14 = vector.broadcast %13 : f32 to vector<8x1xf32>
    %15 = arith.addf %12, %14 : vector<8x1xf32>
    %cst_11 = arith.constant 0.000000e+00 : f32
    %16 = vector.broadcast %cst_11 : f32 to vector<8x1xf32>
    %17 = arith.subf %16, %15 : vector<8x1xf32>
    %18 = math.exp %17 : vector<8x1xf32>
    %cst_12 = arith.constant 1.000000e+00 : f32
    %19 = vector.broadcast %cst_12 : f32 to vector<8x1xf32>
    %20 = arith.addf %19, %18 : vector<8x1xf32>
    %21 = tpu.reciprocal %20 {approx = true} : vector<8x1xf32> -> vector<8x1xf32>
    %c0_13 = arith.constant 0 : index
    %c0_14 = arith.constant 0 : index
    %22 = vector.load %arg6[%c0_13, %c0_14] : memref<8x1xf32, #tpu.memory_space<vmem>>, vector<8x1xf32>
    tpu.vector_store %arg6[%c0_13, %c0_14], %21 {strides = array<i32>} : memref<8x1xf32, #tpu.memory_space<vmem>>, vector<8x1xf32>,
    return
  }
  func.func @transform_0(%arg0: i32) -> (i32, i32) {
    %c0_i32 = arith.constant 0 : i32
    %c0_i32_0 = arith.constant 0 : i32
    return %arg0, %c0_i32 : i32, i32
  }
  func.func @transform_1(%arg0: i32) -> (i32, i32) {
    %c0_i32 = arith.constant 0 : i32
    %c0_i32_0 = arith.constant 0 : i32
    %c0_i32_1 = arith.constant 0 : i32
    return %c0_i32, %c0_i32_0 : i32, i32
  }
  func.func @transform_2(%arg0: i32) -> (i32, i32) {
    %c0_i32 = arith.constant 0 : i32
    %c0_i32_0 = arith.constant 0 : i32
    %c0_i32_1 = arith.constant 0 : i32
    return %c0_i32, %c0_i32_0 : i32, i32
  }
  func.func @transform_3(%arg0: i32) -> (i32, i32) {
    %c0_i32 = arith.constant 0 : i32
    %c0_i32_0 = arith.constant 0 : i32
    %c0_i32_1 = arith.constant 0 : i32
    return %c0_i32, %c0_i32_0 : i32, i32
  }
  func.func @transform_4(%arg0: i32) -> (i32, i32) {
    %c0_i32 = arith.constant 0 : i32
    %c0_i32_0 = arith.constant 0 : i32
    %c0_i32_1 = arith.constant 0 : i32
    return %c0_i32, %c0_i32_0 : i32, i32
  }
  func.func @transform_5(%arg0: i32) -> (i32, i32) {
    %c0_i32 = arith.constant 0 : i32
    %c0_i32_0 = arith.constant 0 : i32
    return %arg0, %c0_i32 : i32, i32
  }
}

</mosaic_0001>

<bundles_post_ra>
// kernel: tpu_custom_call.1
= control target key start
LH: loop header
LB: loop body
LE: loop exit
PB: predicated region body
PF: predicated region fallthrough
CT: control target
= control target key end

     0   :  { %vm349_vm0 = vcmask 261120   ;;  %vm361_vm1 = vcmask 7168   ;;  %s922_s1 = inlined_call_operand.vmem [shape: f32[768,32], index: 1, kind: input, shape index: {}]   ;;  %s923_s0 = inlined_call_operand.vmem [shape: f32[8,768], index: 0, kind: input, shape index: {}]   ;;  %s924_s2 = inlined_call_operand.vmem [shape: f32[1,32], index: 2, kind: input, shape index: {}]   ;;  %s925_s3 = inlined_call_operand.vmem [shape: f32[1,32], index: 3, kind: input, shape index: {}]   ;;  %s926_s4 = inlined_call_operand.<no memory space> [shape: f32[1,1], index: 4, kind: input, shape index: {}]   ;;  %s927_s5 = inlined_call_operand.vmem [shape: f32[8,1], index: 5, kind: output, shape index: {}]  }
   0x1   :  { %v43_v0 = vld [vmem:[%s922_s1 + $0x80] sm:$0xff]  ;;  %v44_v1 = vld [vmem:[%s922_s1 + $0x88] sm:$0xff]  ;;  %v45_v11 = vld [vmem:[%s922_s1 + $0x90] sm:$0xff] }
   0x2   :  { %v27_v2 = vld [vmem:[%s922_s1] sm:$0xff]  ;;  %v474_v3 = vpack.c.bf16 %v44_v1, %v43_v0  ;;  %v28_v4 = vld [vmem:[%s922_s1 + $0x8] sm:$0xff]  ;;  %v46_v13 = vld [vmem:[%s922_s1 + $0x98] sm:$0xff] }
   0x3   :  { %v75_v5 = vld [vmem:[%s922_s1 + $0x180] sm:$0xff]  ;;  %v76_v6 = vld [vmem:[%s922_s1 + $0x188] sm:$0xff]  ;;  %v476_v7 = vpack.c.bf16 %v28_v4, %v27_v2  ;;  %v29_v14 = vld [vmem:[%s922_s1 + $0x10] sm:$0xff]  ;;  %v478_v16 = vpack.c.bf16 %v46_v13, %v45_v11 }
   0x4   :  { %v506_v8 = vpack.c.bf16 %v76_v6, %v75_v5  ;;  %v59_v9 = vld [vmem:[%s922_s1 + $0x100] sm:$0xff]  ;;  %v60_v10 = vld [vmem:[%s922_s1 + $0x108] sm:$0xff]  ;;  %475 = vmatprep.subr.bf16.mxu0 %v474_v3  ;;  %v30_v15 = vld [vmem:[%s922_s1 + $0x18] sm:$0xff] }
   0x5   :  { %v508_v12 = vpack.c.bf16 %v60_v10, %v59_v9  ;;  %477 = vmatpush3.bf16.msra.mxu0 %v476_v7  ;;  %v480_v17 = vpack.c.bf16 %v30_v15, %v29_v14  ;;  %v77_v18 = vld [vmem:[%s922_s1 + $0x190] sm:$0xff]  ;;  %v78_v19 = vld [vmem:[%s922_s1 + $0x198] sm:$0xff]  ;;  %v47_v23 = vld [vmem:[%s922_s1 + $0xa0] sm:$0xff] }
   0x6   :  { %507 = vmatprep.subr.bf16.mxu1 %v506_v8  ;;  %v61_v20 = vld [vmem:[%s922_s1 + $0x110] sm:$0xff]  ;;  %v510_v21 = vpack.c.bf16 %v78_v19, %v77_v18  ;;  %v62_v22 = vld [vmem:[%s922_s1 + $0x118] sm:$0xff]  ;;  %v48_v24 = vld [vmem:[%s922_s1 + $0xa8] sm:$0xff]  ;;  %479 = vmatprep.subr.bf16.mxu0 %v478_v16 }
   0x7   :  { %509 = vmatpush3.bf16.msra.mxu1 %v508_v12  ;;  %v512_v25 = vpack.c.bf16 %v62_v22, %v61_v20  ;;  %v482_v26 = vpack.c.bf16 %v48_v24, %v47_v23  ;;  %v31_v27 = vld [vmem:[%s922_s1 + $0x20] sm:$0xff]  ;;  %v32_v28 = vld [vmem:[%s922_s1 + $0x28] sm:$0xff]  ;;  %v49_v35 = vld [vmem:[%s922_s1 + $0xb0] sm:$0xff] }
   0x8   :  { %v79_v29 = vld [vmem:[%s922_s1 + $0x1a0] sm:$0xff]  ;;  %511 = vmatprep.subr.bf16.mxu1 %v510_v21  ;;  %v80_v30 = vld [vmem:[%s922_s1 + $0x1a8] sm:$0xff]  ;;  %v484_v33 = vpack.c.bf16 %v32_v28, %v31_v27  ;;  %v50_v36 = vld [vmem:[%s922_s1 + $0xb8] sm:$0xff] }
   0x9   :  { %v63_v31 = vld [vmem:[%s922_s1 + $0x120] sm:$0xff]  ;;  %v64_v32 = vld [vmem:[%s922_s1 + $0x128] sm:$0xff]  ;;  %481 = vmatpush3.bf16.msra.mxu0 %v480_v17  ;;  %v514_v34 = vpack.c.bf16 %v80_v30, %v79_v29  ;;  %v33_v37 = vld [vmem:[%s922_s1 + $0x30] sm:$0xff]  ;;  %v486_v39 = vpack.c.bf16 %v50_v36, %v49_v35 }
   0xa   :  { %483 = vmatprep.subr.bf16.mxu0 %v482_v26  ;;  %v516_v38 = vpack.c.bf16 %v64_v32, %v63_v31  ;;  %v34_v40 = vld [vmem:[%s922_s1 + $0x38] sm:$0xff]  ;;  %v81_v41 = vld [vmem:[%s922_s1 + $0x1b0] sm:$0xff]  ;;  %v51_v46 = vld [vmem:[%s922_s1 + $0xc0] sm:$0xff] }
   0xb   :  { %513 = vmatpush3.bf16.msra.mxu1 %v512_v25  ;;  %v82_v42 = vld [vmem:[%s922_s1 + $0x1b8] sm:$0xff]  ;;  %v65_v44 = vld [vmem:[%s922_s1 + $0x130] sm:$0xff]  ;;  %v52_v47 = vld [vmem:[%s922_s1 + $0xc8] sm:$0xff]  ;;  %v488_v48 = vpack.c.bf16 %v34_v40, %v33_v37 }
   0xc   :  { %515 = vmatprep.subr.bf16.mxu1 %v514_v34  ;;  %v518_v43 = vpack.c.bf16 %v82_v42, %v81_v41  ;;  %v66_v45 = vld [vmem:[%s922_s1 + $0x138] sm:$0xff]  ;;  %v83_v49 = vld [vmem:[%s922_s1 + $0x1c0] sm:$0xff]  ;;  %v84_v50 = vld [vmem:[%s922_s1 + $0x1c8] sm:$0xff]  ;;  %v490_v52 = vpack.c.bf16 %v52_v47, %v51_v46 }
   0xd   :  { %485 = vmatpush3.bf16.msra.mxu0 %v484_v33  ;;  %v520_v51 = vpack.c.bf16 %v66_v45, %v65_v44  ;;  %v35_v53 = vld [vmem:[%s922_s1 + $0x40] sm:$0xff]  ;;  %v36_v54 = vld [vmem:[%s922_s1 + $0x48] sm:$0xff]  ;;  %v522_v56 = vpack.c.bf16 %v84_v50, %v83_v49  ;;  %v53_v58 = vld [vmem:[%s922_s1 + $0xd0] sm:$0xff] }
   0xe   :  { %487 = vmatprep.subr.bf16.mxu0 %v486_v39  ;;  %v67_v55 = vld [vmem:[%s922_s1 + $0x140] sm:$0xff]  ;;  %v68_v57 = vld [vmem:[%s922_s1 + $0x148] sm:$0xff]  ;;  %v54_v59 = vld [vmem:[%s922_s1 + $0xd8] sm:$0xff]  ;;  %v492_v62 = vpack.c.bf16 %v36_v54, %v35_v53 }
   0xf   :  { %517 = vmatpush3.bf16.msra.mxu1 %v516_v38  ;;  %v85_v60 = vld [vmem:[%s922_s1 + $0x1d0] sm:$0xff]  ;;  %v86_v61 = vld [vmem:[%s922_s1 + $0x1d8] sm:$0xff]  ;;  %v524_v63 = vpack.c.bf16 %v68_v57, %v67_v55  ;;  %v494_v0 = vpack.c.bf16 %v54_v59, %v53_v58  ;;  %v55_v6 = vld [vmem:[%s922_s1 + $0xe0] sm:$0xff] }
  0x10   :  { %519 = vmatprep.subr.bf16.mxu1 %v518_v43  ;;  %v37_v1 = vld [vmem:[%s922_s1 + $0x50] sm:$0xff]  ;;  %v38_v2 = vld [vmem:[%s922_s1 + $0x58] sm:$0xff]  ;;  %v526_v4 = vpack.c.bf16 %v86_v61, %v85_v60  ;;  %v56_v7 = vld [vmem:[%s922_s1 + $0xe8] sm:$0xff] }
  0x11   :  { %489 = vmatpush3.bf16.msra.mxu0 %v488_v48  ;;  %v69_v3 = vld [vmem:[%s922_s1 + $0x150] sm:$0xff]  ;;  %v70_v5 = vld [vmem:[%s922_s1 + $0x158] sm:$0xff]  ;;  %v87_v8 = vld [vmem:[%s922_s1 + $0x1e0] sm:$0xff]  ;;  %v496_v10 = vpack.c.bf16 %v38_v2, %v37_v1  ;;  %v498_v14 = vpack.c.bf16 %v56_v7, %v55_v6 }
  0x12   :  { %491 = vmatprep.subr.bf16.mxu0 %v490_v52  ;;  %v88_v9 = vld [vmem:[%s922_s1 + $0x1e8] sm:$0xff]  ;;  %v39_v11 = vld [vmem:[%s922_s1 + $0x60] sm:$0xff]  ;;  %v528_v13 = vpack.c.bf16 %v70_v5, %v69_v3  ;;  %v57_v19 = vld [vmem:[%s922_s1 + $0xf0] sm:$0xff] }
  0x13   :  { %521 = vmatpush3.bf16.msra.mxu1 %v520_v51  ;;  %v22_v12 = vld [vmem:[%s923_s0 + $0x8] sm:$0xff]  ;;  %v71_v16 = vld [vmem:[%s922_s1 + $0x160] sm:$0xff]  ;;  %v530_v18 = vpack.c.bf16 %v88_v9, %v87_v8  ;;  %v58_v20 = vld [vmem:[%s922_s1 + $0xf8] sm:$0xff] }
  0x14   :  { %523 = vmatprep.subr.bf16.mxu1 %v522_v56  ;;  %v40_v15 = vld [vmem:[%s922_s1 + $0x68] sm:$0xff]  ;;  %194 = vmatprep.mubr.f32.mxu0 %v22_v12  ;;  %v24_v21 = vld [vmem:[%s923_s0 + $0x18] sm:$0xff]  ;;  %v89_v22 = vld [vmem:[%s922_s1 + $0x1f0] sm:$0xff]  ;;  %v502_v26 = vpack.c.bf16 %v58_v20, %v57_v19 }
  0x15   :  { %493 = vmatpush3.bf16.msra.mxu0 %v492_v62  ;;  %v72_v17 = vld [vmem:[%s922_s1 + $0x168] sm:$0xff]  ;;  %v90_v23 = vld [vmem:[%s922_s1 + $0x1f8] sm:$0xff]  ;;  %264 = vmatprep.mubr.f32.mxu1 %v24_v21  ;;  %v500_v24 = vpack.c.bf16 %v40_v15, %v39_v11  ;;  %v41_v27 = vld [vmem:[%s922_s1 + $0x70] sm:$0xff] }
  0x16   :  { %495 = vmatprep.subr.bf16.mxu0 %v494_v0  ;;  %v532_v25 = vpack.c.bf16 %v72_v17, %v71_v16  ;;  %v42_v28 = vld [vmem:[%s922_s1 + $0x78] sm:$0xff]  ;;  %v73_v29 = vld [vmem:[%s922_s1 + $0x170] sm:$0xff]  ;;  %v534_v30 = vpack.c.bf16 %v90_v23, %v89_v22  ;;  %v107_v32 = vld [vmem:[%s922_s1 + $0x280] sm:$0xff] }
  0x17   :  { %525 = vmatpush3.bf16.msra.mxu1 %v524_v63  ;;  %v74_v31 = vld [vmem:[%s922_s1 + $0x178] sm:$0xff]  ;;  %v108_v33 = vld [vmem:[%s922_s1 + $0x288] sm:$0xff]  ;;  %v504_v34 = vpack.c.bf16 %v42_v28, %v41_v27  ;;  %v91_v37 = vld [vmem:[%s922_s1 + $0x200] sm:$0xff] }
  0x18   :  { %527 = vmatprep.subr.bf16.mxu1 %v526_v4  ;;  %v536_v35 = vpack.c.bf16 %v74_v31, %v73_v29  ;;  %v538_v36 = vpack.c.bf16 %v108_v33, %v107_v32  ;;  %v92_v38 = vld [vmem:[%s922_s1 + $0x208] sm:$0xff]  ;;  %v109_v39 = vld [vmem:[%s922_s1 + $0x290] sm:$0xff]  ;;  %v110_v40 = vld [vmem:[%s922_s1 + $0x298] sm:$0xff] }
  0x19   :  { %497 = vmatpush3.bf16.msra.mxu0 %v496_v10  ;;  %v21_v41 = vld [vmem:[%s923_s0] sm:$0xff]  ;;  %v540_v42 = vpack.c.bf16 %v92_v38, %v91_v37  ;;  %v23_v43 = vld [vmem:[%s923_s0 + $0x10] sm:$0xff]  ;;  %v542_v44 = vpack.c.bf16 %v110_v40, %v109_v39  ;;  %v94_v46 = vld [vmem:[%s922_s1 + $0x218] sm:$0xff]  ;;  %v354_v39 = vstv %s926_s4 }
  0x1a   :  { %499 = vmatprep.subr.bf16.mxu0 %v498_v14  ;;  %v93_v45 = vld [vmem:[%s922_s1 + $0x210] sm:$0xff]  ;;  %v111_v47 = vld [vmem:[%s922_s1 + $0x2a0] sm:$0xff]  ;;  %v112_v48 = vld [vmem:[%s922_s1 + $0x2a8] sm:$0xff] }
  0x1b   :  { %529 = vmatpush3.bf16.msra.mxu1 %v528_v13  ;;  %v26_v49 = vld [vmem:[%s923_s0 + $0x28] sm:$0xff]  ;;  %v544_v50 = vpack.c.bf16 %v94_v46, %v93_v45  ;;  %v546_v51 = vpack.c.bf16 %v112_v48, %v111_v47  ;;  %v95_v52 = vld [vmem:[%s922_s1 + $0x220] sm:$0xff]  ;;  %v113_v54 = vld [vmem:[%s922_s1 + $0x2b0] sm:$0xff] }
  0x1c   :  { %531 = vmatprep.subr.bf16.mxu1 %v530_v18  ;;  %v96_v53 = vld [vmem:[%s922_s1 + $0x228] sm:$0xff]  ;;  %v114_v55 = vld [vmem:[%s922_s1 + $0x2b8] sm:$0xff]  ;;  %v97_v58 = vld [vmem:[%s922_s1 + $0x230] sm:$0xff] }
  0x1d   :  { %501 = vmatpush3.bf16.msra.mxu0 %v500_v24  ;;  %v548_v56 = vpack.c.bf16 %v96_v53, %v95_v52  ;;  %v550_v57 = vpack.c.bf16 %v114_v55, %v113_v54  ;;  %v98_v59 = vld [vmem:[%s922_s1 + $0x238] sm:$0xff]  ;;  %v115_v60 = vld [vmem:[%s922_s1 + $0x2c0] sm:$0xff]  ;;  %v116_v61 = vld [vmem:[%s922_s1 + $0x2c8] sm:$0xff] }
  0x1e   :  { %503 = vmatprep.subr.bf16.mxu0 %v502_v26  ;;  %v552_v62 = vpack.c.bf16 %v98_v59, %v97_v58  ;;  %v554_v63 = vpack.c.bf16 %v116_v61, %v115_v60  ;;  %v99_v0 = vld [vmem:[%s922_s1 + $0x240] sm:$0xff]  ;;  %v100_v1 = vld [vmem:[%s922_s1 + $0x248] sm:$0xff]  ;;  %v117_v2 = vld [vmem:[%s922_s1 + $0x2d0] sm:$0xff] }
  0x1f   :  { %533 = vmatpush3.bf16.msra.mxu1 %v532_v25  ;;  %v118_v3 = vld [vmem:[%s922_s1 + $0x2d8] sm:$0xff]  ;;  %v556_v4 = vpack.c.bf16 %v100_v1, %v99_v0  ;;  %v101_v6 = vld [vmem:[%s922_s1 + $0x250] sm:$0xff]  ;;  %v119_v8 = vld [vmem:[%s922_s1 + $0x2e0] sm:$0xff] }
  0x20   :  { %535 = vmatprep.subr.bf16.mxu1 %v534_v30  ;;  %v558_v5 = vpack.c.bf16 %v118_v3, %v117_v2  ;;  %v102_v7 = vld [vmem:[%s922_s1 + $0x258] sm:$0xff]  ;;  %v120_v9 = vld [vmem:[%s922_s1 + $0x2e8] sm:$0xff]  ;;  %v103_v12 = vld [vmem:[%s922_s1 + $0x260] sm:$0xff] }
  0x21   :  { %505 = vmatpush3.bf16.msra.mxu0 %v504_v34  ;;  %v560_v10 = vpack.c.bf16 %v102_v7, %v101_v6  ;;  %v562_v11 = vpack.c.bf16 %v120_v9, %v119_v8  ;;  %v104_v13 = vld [vmem:[%s922_s1 + $0x268] sm:$0xff]  ;;  %v121_v14 = vld [vmem:[%s922_s1 + $0x2f0] sm:$0xff]  ;;  %v122_v15 = vld [vmem:[%s922_s1 + $0x2f8] sm:$0xff] }
  0x22   :  { %539 = vmatprep.subr.bf16.mxu0 %v538_v36  ;;  %v564_v16 = vpack.c.bf16 %v104_v13, %v103_v12  ;;  %v566_v17 = vpack.c.bf16 %v122_v15, %v121_v14  ;;  %v105_v18 = vld [vmem:[%s922_s1 + $0x270] sm:$0xff]  ;;  %v106_v19 = vld [vmem:[%s922_s1 + $0x278] sm:$0xff]  ;;  %v25_v21 = vld [vmem:[%s923_s0 + $0x20] sm:$0xff] }
  0x23   :  { %537 = vmatpush3.bf16.msra.mxu1 %v536_v35  ;;  %v568_v20 = vpack.c.bf16 %v106_v19, %v105_v18  ;;  %v367_v23 = vld [vmem:[%s924_s2] ss:$0 sm:$0xff] }
  0x24   :  { %195 = vmatmul.mubr.f32.vlgmr.msra.gmra.mrb[0].mxu0 %v21_v41  ;;  %v368_v35 = vld [vmem:[%s925_s3] ss:$0 sm:$0xff] }
  0x25   :  { %541 = vmatpush3.bf16.msra.mxu0 %v540_v42  ;;  %334 = vmatprep.mubr.f32.mxu0 %v26_v49 }
  0x26   :  { %265 = vmatmul.mubr.f32.vlgmr.msra.gmra.mrb[0].mxu1 %v23_v43  ;;  %543 = vmatprep.subr.bf16.mxu0 %v542_v44 }
  0x29   :  { %545 = vmatpush3.bf16.msra.mxu0 %v544_v50 }
  0x2a   :  { %547 = vmatprep.subr.bf16.mxu0 %v546_v51 }
  0x2d   :  { %549 = vmatpush3.bf16.msra.mxu0 %v548_v56 }
  0x2e   :  { %551 = vmatprep.subr.bf16.mxu0 %v550_v57 }
  0x31   :  { %553 = vmatpush3.bf16.msra.mxu0 %v552_v62 }
  0x32   :  { %555 = vmatprep.subr.bf16.mxu0 %v554_v63 }
  0x35   :  { %557 = vmatpush3.bf16.msra.mxu0 %v556_v4 }
  0x36   :  { %559 = vmatprep.subr.bf16.mxu0 %v558_v5 }
  0x39   :  { %561 = vmatpush3.bf16.msra.mxu0 %v560_v10 }
  0x3a   :  { %563 = vmatprep.subr.bf16.mxu0 %v562_v11 }
  0x3d   :  { %565 = vmatpush3.bf16.msra.mxu0 %v564_v16 }
  0x3e   :  { %567 = vmatprep.subr.bf16.mxu0 %v566_v17 }
  0x41   :  { %569 = vmatpush3.bf16.msra.mxu0 %v568_v20 }
  0x44   :  { %335 = vmatmul.mubr.f32.vlgmr.msra.gmra.mrb[2].mxu0 %v25_v21 }
  0xf7   :  { %v401_v22 = vpop.f32.mrb[0].mxu0 }
  0xf8   :  { %v402_v24 = vpop.f32.mrb[1].mxu0 }
  0xf9   :  { %v436_v25 = vpop.f32.mrb[0].mxu1  ;;  %v403_v26 = vadd.f32 %v402_v24, %v401_v22 }
  0xfa   :  { %v437_v27 = vpop.f32.mrb[1].mxu1 }
  0xfb   :  { %v438_v28 = vadd.f32 %v437_v27, %v436_v25  ;;  %v197_v29 = vadd.f32 %v403_v26, %v367_v23 }
  0xfd   :  { %v267_v30 = vadd.f32 %v438_v28, %v197_v29 }
 0x117   :  { %v471_v31 = vpop.f32.mrb[2].mxu0 }
 0x118   :  { %v472_v32 = vpop.f32.mrb[3].mxu0 }
 0x119   :  { %v473_v33 = vadd.f32 %v472_v32, %v471_v31 }
 0x11b   :  { %v337_v34 = vadd.f32 %v473_v33, %v267_v30 }
 0x11d   :  { %v340_v36 = vmax.f32 %v337_v34, 0.0 }
 0x11f   :  { %v348_v37 = vmul.f32 %v368_v35, %v340_v36 }
 0x121   :  { %v350_v38 = vsel %vm349_vm0, %v348_v37, 0.0 }
 0x122   :  { %351 = vadd.xlane.f32.xlu0 %v350_v38 }
 0x1af   :  { %v352_v40 = vpop.xlane.xlu0 %351 }
 0x1b0   :  { %v355_v41 = vadd.f32 %v354_v39, %v352_v40 }
 0x1b2   :  { %v356_v42 = vsub.f32 0.0, %v355_v41 }
 0x1b4   :  { %v357_v43 = vmul.f32 1.442695, %v356_v42 }
 0x1b6   :  { %570 = vpow2.f32 %v357_v43 }
 0x1c0   :  { %v571_v44 = vpop.eup %570 }
 0x1c1   :  { %v359_v45 = vadd.f32 1.0, %v571_v44 }
 0x1c3   :  { %572 = vrcp.f32 %v359_v45 }
 0x1cd   :  { %v573_v46 = vpop.eup %572 }
 0x1ce   :  { %362 = vst.msk [vmem:[%s927_s5] sm:$0xff] %vm361_vm1, %v573_v46 }

</bundles_post_ra>
